<compile_context>
chip_gen: v7x
topology: tpu7x:2x2x1
jax: 0.10.0
libtpu: 0.0.40
codegen_flags: <defaults>
</compile_context>

<pallas_src>
import jax
import jax.numpy as jnp
from jax.experimental import pallas as pl
from jax.experimental.pallas import tpu as pltpu

_LANE = 128


def _round_up(v, m):
    return ((v + m - 1) // m) * m


def _make_kernel(has_bias, batch_tile):
    """Kernel body: (tco, C_in) x (C_in, tl) MXU matmul (+ f32 bias) per batch row."""
    if has_bias:
        def kernel(x_ref, w_ref, b_ref, o_ref):
            w = w_ref[...]
            b = b_ref[...]                                   # (tco, 1) float32
            if batch_tile == 1:
                acc = jnp.dot(w, x_ref[...], preferred_element_type=jnp.float32)
                o_ref[...] = (acc + b).astype(o_ref.dtype)
            else:
                for i in range(batch_tile):                  # static unroll over batch tile
                    acc = jnp.dot(w, x_ref[i], preferred_element_type=jnp.float32)
                    o_ref[i] = (acc + b).astype(o_ref.dtype)
    else:
        def kernel(x_ref, w_ref, o_ref):
            w = w_ref[...]
            if batch_tile == 1:
                acc = jnp.dot(w, x_ref[...], preferred_element_type=jnp.float32)
                o_ref[...] = acc.astype(o_ref.dtype)
            else:
                for i in range(batch_tile):
                    acc = jnp.dot(w, x_ref[i], preferred_element_type=jnp.float32)
                    o_ref[i] = acc.astype(o_ref.dtype)
    return kernel


def _vmem_budget():
    """Generation-aware (v5e/v6e/v7x) streaming budget and scoped-VMEM limit."""
    try:
        cap = int(pltpu.get_tpu_info().vmem_capacity_bytes)
    except Exception:
        cap = 64 * 1024 * 1024                 # conservative (v7x-sized) fallback
    # v7x (64 MiB VMEM/TC)  -> ~40 MiB tile budget, 56 MiB scoped limit
    # v5e/v6e (128 MiB)     -> 48 MiB tile budget, 96 MiB scoped limit
    budget = min(48 * 1024 * 1024, (cap * 5) // 8)
    limit = max(min(96 * 1024 * 1024, (cap * 7) // 8), budget + (8 << 20))
    return budget, limit


def _pick_tiles(n, l_out, c_in, c_out, itemsize, budget_bytes):
    """Pick (batch_tile, c_out_tile, l_tile, num_l_tiles)."""
    target_step_bytes = 2 * 1024 * 1024        # x bytes per grid step to aim for

    # --- C_out tile: keep the whole weight VMEM-resident unless it is huge. ---
    if 2 * c_out * c_in * itemsize <= budget_bytes // 3:
        tco = c_out
    else:
        tco = (budget_bytes // 3) // (2 * c_in * itemsize)
        tco = min(c_out, max(8, (tco // _LANE) * _LANE))
    fixed = 2 * tco * c_in * itemsize + 2 * tco * 4      # dbl-buffered weight + f32 bias

    per_col = 2 * (c_in + tco) * itemsize                # dbl-buffered in+out bytes / column
    avail = max(budget_bytes - fixed, _LANE * per_col)

    # --- L tile: lane-dense, big enough to hit the per-step byte target. ---
    want_tl = max(_LANE, target_step_bytes // max(1, c_in * itemsize))
    max_tl = max(_LANE, avail // per_col)
    tl = max(_LANE, (min(want_tl, max_tl) // _LANE) * _LANE)
    if tl >= l_out:
        tl = l_out                       # single full-extent tile (exempt from /128 rule)
    num_l = pl.cdiv(l_out, tl)

    # --- Batch tile: amortize grid-step overhead when a full-L tile is tiny. ---
    bt = 1
    if num_l == 1 and n > 1:
        step_bytes = c_in * l_out * itemsize
        if step_bytes < target_step_bytes:
            bt = min(n, 8,
                     max(1, target_step_bytes // max(1, step_bytes)),
                     max(1, avail // max(1, per_col * l_out)))
            # Keep >=2 batch programs when there is enough work for v7x's 2nd TC.
            if bt >= n and n * step_bytes > (4 << 20):
                bt = max(1, pl.cdiv(n, 2))

    # --- v7x: 2 TensorCores share the 'parallel' grid axes; avoid a 1-program grid. ---
    if (pl.cdiv(n, bt) * pl.cdiv(c_out, tco) * num_l == 1
            and n == 1 and l_out >= 2 * _LANE):
        tl = _round_up(pl.cdiv(l_out, 2), _LANE)
        num_l = pl.cdiv(l_out, tl)

    return bt, tco, tl, num_l


def _pw_conv1d_core(x, weight, bias, *, l_tile=None, batch_tile=None):
    n, c_in, l_out = x.shape
    c_out = weight.shape[0]
    itemsize = jnp.dtype(x.dtype).itemsize

    budget, vmem_limit = _vmem_budget()
    bt, tco, tl, num_l = _pick_tiles(n, l_out, c_in, c_out, itemsize, budget)

    if l_tile is not None:                       # manual overrides (testing / tuning)
        tl = min(int(l_tile), l_out)
        if tl < l_out:
            tl = max(_LANE, (tl // _LANE) * _LANE)
        num_l = pl.cdiv(l_out, tl)
    if batch_tile is not None:
        bt = max(1, min(int(batch_tile), n))

    num_b = pl.cdiv(n, bt)
    num_co = pl.cdiv(c_out, tco)

    if bt > 1:
        x_spec = pl.BlockSpec((bt, c_in, tl), lambda b, o, l: (b, 0, l))
        o_spec = pl.BlockSpec((bt, tco, tl), lambda b, o, l: (b, o, l))
    else:
        # Batch dim squeezed out of the refs: plain 2-D (tco,C_in)x(C_in,tl) body.
        x_spec = pl.BlockSpec((None, c_in, tl), lambda b, o, l: (b, 0, l))
        o_spec = pl.BlockSpec((None, tco, tl), lambda b, o, l: (b, o, l))
    w_spec = pl.BlockSpec((tco, c_in), lambda b, o, l: (o, 0))

    has_bias = bias is not None
    kernel = _make_kernel(has_bias, bt)

    in_specs = [x_spec, w_spec]
    args = [x, weight]
    if has_bias:
        in_specs.append(pl.BlockSpec((tco, 1), lambda b, o, l: (o, 0)))
        # Bias stays float32 (added onto the f32 accumulator) — no bf16 pre-rounding.
        args.append(bias.reshape(c_out, 1).astype(jnp.float32))

    bytes_accessed = ((n * c_in * l_out + n * c_out * l_out) * itemsize
                      + c_out * c_in * itemsize + (c_out * 4 if has_bias else 0))
    cost = pl.CostEstimate(flops=2 * n * c_out * c_in * l_out,
                           transcendentals=0,
                           bytes_accessed=bytes_accessed)

    return pl.pallas_call(
        kernel,
        out_shape=jax.ShapeDtypeStruct((n, c_out, l_out), x.dtype),
        grid_spec=pltpu.PrefetchScalarGridSpec(
            num_scalar_prefetch=0,
            grid=(num_b, num_co, num_l),
            in_specs=in_specs,
            out_specs=o_spec,
        ),
        compiler_params=pltpu.CompilerParams(
            dimension_semantics=("parallel", "parallel", "parallel"),
            vmem_limit_bytes=vmem_limit,
        ),
        cost_estimate=cost,
    )(*args)


def pointwise_conv1d(x, weight, bias=None, *, stride: int = 1, padding: int = 0,
                     l_tile=None, batch_tile=None):
    """nn.Conv1d(kernel_size=1) forward.

    x: (N, C_in, L); weight: (C_out, C_in) or (C_out, C_in, 1); bias: (C_out,) or None.
    Accumulates in f32; I/O stays in x.dtype (passing bf16 x halves HBM traffic).
    """
    n, c_in, _ = x.shape
    c_out = weight.shape[0]
    weight = weight.reshape(c_out, c_in).astype(x.dtype)

    pad_out = 0
    if padding > 0 and stride == 1:
        # k=1 conv: padded output columns are exactly the bias -> fill them on the
        # output side instead of materializing a padded copy of x in HBM.
        pad_out = padding
    elif padding > 0:
        # TODO(synk): fold combined padding+stride into the kernel's index plumbing
        # instead of materializing a padded copy of x.
        x = jnp.pad(x, ((0, 0), (0, 0), (padding, padding)))
    if stride > 1:
        # TODO(synk): fold the stride into a strided pl.ds / manual-DMA tile read so
        # x is not re-materialized in HBM.
        x = x[:, :, ::stride]

    out = _pw_conv1d_core(x, weight, bias, l_tile=l_tile, batch_tile=batch_tile)

    if pad_out > 0:
        if bias is not None:
            edge = jnp.broadcast_to(bias.astype(out.dtype)[None, :, None],
                                    (n, c_out, pad_out))
        else:
            edge = jnp.zeros((n, c_out, pad_out), out.dtype)
        out = jnp.concatenate([edge, out, edge], axis=2)
    return out


if __name__ == "__main__":
    # Small shapes consistent with Conv1d: batch=2, in_channels=4, out_channels=8, seq=16
    batch, in_channels, out_channels, seq = 2, 4, 8, 16

    key = jax.random.PRNGKey(0)
    kx, kw, kb, kx2 = jax.random.split(key, 4)
    x = jax.random.normal(kx, (batch, in_channels, seq), dtype=jnp.float32)
    weight = jax.random.normal(kw, (out_channels, in_channels), dtype=jnp.float32) * 0.1
    bias = jax.random.normal(kb, (out_channels,), dtype=jnp.float32) * 0.1

    def ref_conv1d(x, w, b, stride=1, padding=0):
        xp = jnp.pad(x, ((0, 0), (0, 0), (padding, padding)))
        xp = xp[:, :, ::stride]
        y = jnp.einsum("oc,ncl->nol", w, xp)
        if b is not None:
            y = y + b[None, :, None]
        return y

    # 1) default path (batch-blocked kernel at this tiny L) + bias
    y = jax.block_until_ready(pointwise_conv1d(x, weight, bias))
    assert y.shape == (batch, out_channels, seq), y.shape
    assert jnp.allclose(y, ref_conv1d(x, weight, bias), atol=1e-5, rtol=1e-5)

    # 2) squeezed-batch path + no bias
    y2 = jax.block_until_ready(pointwise_conv1d(x, weight, None, batch_tile=1))
    assert jnp.allclose(y2, ref_conv1d(x, weight, None), atol=1e-5, rtol=1e-5)

    # 3) ragged last L tile (no wrapper-side pad/slice round trip)
    xl = jax.random.normal(kx2, (batch, in_channels, 200), dtype=jnp.float32)
    y3 = jax.block_until_ready(
        pointwise_conv1d(xl, weight, bias, l_tile=128, batch_tile=1))
    assert jnp.allclose(y3, ref_conv1d(xl, weight, bias), atol=1e-5, rtol=1e-5)

    # 4) ragged last batch tile (batched kernel, masked trailing rows)
    x6 = jax.random.normal(kx2, (3, in_channels, seq), dtype=jnp.float32)
    y6 = jax.block_until_ready(pointwise_conv1d(x6, weight, bias, batch_tile=2))
    assert jnp.allclose(y6, ref_conv1d(x6, weight, bias), atol=1e-5, rtol=1e-5)

    # 5) stride / padding plumbing (padding handled as bias-only output columns)
    y4 = jax.block_until_ready(pointwise_conv1d(x, weight, bias, stride=2, padding=0))
    assert jnp.allclose(y4, ref_conv1d(x, weight, bias, stride=2), atol=1e-5, rtol=1e-5)
    y5 = jax.block_until_ready(pointwise_conv1d(x, weight, bias, stride=1, padding=2))
    assert jnp.allclose(y5, ref_conv1d(x, weight, bias, padding=2), atol=1e-5, rtol=1e-5)

    print("KERNEL_OK")
</pallas_src>

<mosaic_0001>
module attributes {stable_mosaic.version = 11 : i64} {
  func.func @kernel(%arg0: i32, %arg1: i32, %arg2: i32, %arg3: memref<2x4x16xf32, #tpu.memory_space<vmem>>, %arg4: memref<8x4xf32, #tpu.memory_space<vmem>>, %arg5: memref<8x1xf32, #tpu.memory_space<vmem>>, %arg6: memref<2x8x16xf32, #tpu.memory_space<vmem>>) attributes {dimension_semantics = [#tpu.dimension_semantics<parallel>, #tpu.dimension_semantics<parallel>, #tpu.dimension_semantics<parallel>], iteration_bounds = array<i64: 1, 1, 1>, scalar_prefetch = 0 : i64, scratch_operands = 0 : i64, tpu.core_type = #tpu.core_type<tc>, window_params = [{transform_indices = @transform_0, window_bounds = array<i64: 2, 4, 16>}, {transform_indices = @transform_1, window_bounds = array<i64: 8, 4>}, {transform_indices = @transform_2, window_bounds = array<i64: 8, 1>}, {transform_indices = @transform_3, window_bounds = array<i64: 2, 8, 16>}]} {
    %c0 = arith.constant 0 : index
    %c0_0 = arith.constant 0 : index
    %0 = vector.load %arg4[%c0, %c0_0] : memref<8x4xf32, #tpu.memory_space<vmem>>, vector<8x4xf32>
    %c0_1 = arith.constant 0 : index
    %c0_2 = arith.constant 0 : index
    %1 = vector.load %arg5[%c0_1, %c0_2] : memref<8x1xf32, #tpu.memory_space<vmem>>, vector<8x1xf32>
    %c0_3 = arith.constant 0 : index
    %c0_4 = arith.constant 0 : index
    %c0_5 = arith.constant 0 : index
    %2 = vector.load %arg3[%c0_3, %c0_4, %c0_5] : memref<2x4x16xf32, #tpu.memory_space<vmem>>, vector<1x4x16xf32>
    %3 = vector.shape_cast %2 : vector<1x4x16xf32> to vector<4x16xf32>
    %cst = arith.constant dense<0.000000e+00> : vector<8x16xf32>
    %4 = tpu.matmul %0, %3, %cst {dimension_numbers = #tpu.dot_dimension_numbers<[1], [0], [0], [1], [0, 0, 1, 1], [], []>} : vector<8x4xf32>, vector<4x16xf32>, vector<8x16xf32> -> vector<8x16xf32>
    %5 = vector.broadcast %1 : vector<8x1xf32> to vector<8x16xf32>
    %6 = arith.addf %4, %5 : vector<8x16xf32>
    %c0_6 = arith.constant 0 : index
    %c0_7 = arith.constant 0 : index
    %c0_8 = arith.constant 0 : index
    %7 = vector.load %arg6[%c0_6, %c0_7, %c0_8] : memref<2x8x16xf32, #tpu.memory_space<vmem>>, vector<1x8x16xf32>
    %8 = vector.shape_cast %7 : vector<1x8x16xf32> to vector<8x16xf32>
    %9 = vector.shape_cast %6 : vector<8x16xf32> to vector<1x8x16xf32>
    tpu.vector_store %arg6[%c0_6, %c0_7, %c0_8], %9 {strides = array<i32>} : memref<2x8x16xf32, #tpu.memory_space<vmem>>, vector<1x8x16xf32>,
    %c1 = arith.constant 1 : index
    %c0_9 = arith.constant 0 : index
    %c0_10 = arith.constant 0 : index
    %10 = vector.load %arg3[%c1, %c0_9, %c0_10] : memref<2x4x16xf32, #tpu.memory_space<vmem>>, vector<1x4x16xf32>
    %11 = vector.shape_cast %10 : vector<1x4x16xf32> to vector<4x16xf32>
    %cst_11 = arith.constant dense<0.000000e+00> : vector<8x16xf32>
    %12 = tpu.matmul %0, %11, %cst_11 {dimension_numbers = #tpu.dot_dimension_numbers<[1], [0], [0], [1], [0, 0, 1, 1], [], []>} : vector<8x4xf32>, vector<4x16xf32>, vector<8x16xf32> -> vector<8x16xf32>
    %13 = vector.broadcast %1 : vector<8x1xf32> to vector<8x16xf32>
    %14 = arith.addf %12, %13 : vector<8x16xf32>
    %c1_12 = arith.constant 1 : index
    %c0_13 = arith.constant 0 : index
    %c0_14 = arith.constant 0 : index
    %15 = vector.load %arg6[%c1_12, %c0_13, %c0_14] : memref<2x8x16xf32, #tpu.memory_space<vmem>>, vector<1x8x16xf32>
    %16 = vector.shape_cast %15 : vector<1x8x16xf32> to vector<8x16xf32>
    %17 = vector.shape_cast %14 : vector<8x16xf32> to vector<1x8x16xf32>
    tpu.vector_store %arg6[%c1_12, %c0_13, %c0_14], %17 {strides = array<i32>} : memref<2x8x16xf32, #tpu.memory_space<vmem>>, vector<1x8x16xf32>,
    return
  }
  func.func @transform_0(%arg0: i32, %arg1: i32, %arg2: i32) -> (i32, i32, i32) {
    %c0_i32 = arith.constant 0 : i32
    %c0_i32_0 = arith.constant 0 : i32
    return %arg0, %c0_i32, %arg2 : i32, i32, i32
  }
  func.func @transform_1(%arg0: i32, %arg1: i32, %arg2: i32) -> (i32, i32) {
    %c0_i32 = arith.constant 0 : i32
    %c0_i32_0 = arith.constant 0 : i32
    return %arg1, %c0_i32 : i32, i32
  }
  func.func @transform_2(%arg0: i32, %arg1: i32, %arg2: i32) -> (i32, i32) {
    %c0_i32 = arith.constant 0 : i32
    %c0_i32_0 = arith.constant 0 : i32
    return %arg1, %c0_i32 : i32, i32
  }
  func.func @transform_3(%arg0: i32, %arg1: i32, %arg2: i32) -> (i32, i32, i32) {
    %c0_i32 = arith.constant 0 : i32
    return %arg0, %arg1, %arg2 : i32, i32, i32
  }
}

</mosaic_0001>

<bundles_post_ra>
// kernel: tpu_custom_call.1
= control target key start
LH: loop header
LB: loop body
LE: loop exit
PB: predicated region body
PF: predicated region fallthrough
CT: control target
= control target key end

     0   :  { %vm27_vm0 = vcmask 1043456   ;;  %v246_v1 = vmov 0.0   ;;  %vm23_vm1 = vcmask 31744   ;;  %vm247_vm2 = vmmov 0   ;;  %s296_s0 = inlined_call_operand.vmem [shape: f32[2,4,16], index: 0, kind: input, shape index: {}]   ;;  %s297_s1 = inlined_call_operand.vmem [shape: f32[8,4], index: 1, kind: input, shape index: {}]   ;;  %s298_s2 = inlined_call_operand.vmem [shape: f32[8,1], index: 2, kind: input, shape index: {}]   ;;  %s299_s3 = inlined_call_operand.hbm [shape: f32[2,8,16], index: 3, kind: output, shape index: {}]  }
   0x1   :  { %v17_v0 = vld [vmem:[%s296_s0] sm:$0xf]  ;;  %205 = vmatprep.subr.mxu0 %v246_v1  ;;  %210 = vmatprep.subr.mxu1 %v246_v1  ;;  %v198_v2 = vld [vmem:[%s296_s0 + $0x4] sm:$0xf] }
   0x2   :  { %v15_v3 = vld [vmem:[%s297_s1] sm:$0xff]  ;;  %206 = vmatpush3.msk.msra.mxu0 %vm27_vm0, %v17_v0  ;;  %207 = vmatprep.mubr.msk.f32.mxu0 %vm247_vm2, %v246_v1 }
   0x3   :  { %8 = vsyncpa [#allocation3], 0  ;;  %211 = vmatpush3.msk.msra.mxu1 %vm27_vm0, %v198_v2  ;;  %212 = vmatprep.mubr.msk.f32.mxu1 %vm247_vm2, %v246_v1  ;;  %v16_v4 = vld [vmem:[%s298_s2] sm:$0xff]  ;;  %v248_v5 = vmov 0   ;;  %s249_s0 = smov [#allocation2]   ;;  %vm101_vm3 = vcmask 130048  }
   0x4   :  { %208 = vmatmul.mubr.msk.f32.vlgmr.msra.gmra.mrb[0].mxu0 %vm23_vm1, %v15_v3  ;;  %213 = vmatmul.mubr.msk.f32.vlgmr.msra.gmra.mrb[0].mxu1 %vm23_vm1, %v15_v3  ;;  %s185_s20 = sshll.u32 %s249_s0, 4  ;;  %s186_s20 = int_to_ptr.vmem [resolvable:$true] %s185_s20 }
   0x5   :  { %221 = vset.pattern.permute.xlu0 %v248_v5  ;;  %s222_s1 = scalar_lea.vmem %s186_s20, 256  ;;  %p227_p1 = scmp.lt.s32.totalorder %s186_s20, %s186_s20 }
   0x6   :  { %20 = vperm.xlu0 %221, %v16_v4   ;;  %p223_p0 = scmp.ne.s32.totalorder %s186_s20, %s222_s1  ;;  %p228_p2 = scmp.lt.s32.totalorder %s222_s1, %s222_s1 }
   0x8   :  { %p229_p3 = por %p228_p2, %p227_p1 }
   0xa   :  { %p230_p4 = pnand %p229_p3, %p223_p0 }
  0x85   :  { %v21_v6 = vpop.permute.xlu0 %20 }
  0xd7   :  { %v97_v7 = vpop.f32.mrb[0].mxu0  ;;  %v174_v8 = vpop.f32.mrb[0].mxu1 }
  0xd8   :  { %v98_v9 = vadd.f32 %v97_v7, %v21_v6  ;;  %v175_v10 = vadd.f32 %v174_v8, %v21_v6  ;;  %v209_v11 = vpop.f32.mrb[1].mxu0  ;;  %v214_v12 = vpop.f32.mrb[1].mxu1 }
  0xda   :  { %102 = vst.msk [vmem:[#allocation2] sm:$0xff] %vm101_vm3, %v98_v9  ;;  %179 = vst.msk [vmem:[#allocation2 + $0x8] sm:$0xff] %vm101_vm3, %v175_v10 }
  0xdb   :  { %233 = shalt.err (!%p230_p4)
}
  0xdc   :  { %s234_s22 = scalar_lea.hbm %s299_s3, 256 }
  0xdd   :  { %p235_p5 = scmp.ne.s32.totalorder %s299_s3, %s234_s22  ;;  %p238_p6 = scmp.lt.u32.totalorder %s234_s22, %s299_s3 }
  0xdf   :  { %p240_p7 = pnand %p238_p6, %p235_p5 }
  0xe1   :  { %243 = shalt.err (!%p240_p7)
}
  0xe2   :  { %s250_s27 = smov 128   ;;  %s251_s28 = smov 8  }
  0xe3   :  { %191 = dma.vmem_to_hbm [thread:$0]  %s186_s20, 256, %s299_s3, [#allocation3], %s250_s27, %s250_s27, %s251_s28  }
  0xe4   :  { %244 = dma.done.wait [#allocation3], 256  }
  0xe5   :  { %245 = vsyncadd [#allocation3], 4294967040 }
  0xe6   :  { %195 = vsyncpa [#allocation3], 1 }

</bundles_post_ra>
